<compile_context>
chip_gen: v7x
topology: tpu7x:2x2x1
jax: 0.10.0
libtpu: 0.0.40
codegen_flags: <defaults>
</compile_context>

<pallas_src>
import functools
import math

import jax
import jax.numpy as jnp
from jax.experimental import pallas as pl
from jax.experimental.pallas import tpu as pltpu


def _focal_loss_kernel(x_ref, t_ref, o_ref, *, gamma, eps, total_rows,
                       block_rows, mask_tail):
    x = x_ref[...].astype(jnp.float32)
    t = t_ref[...].astype(jnp.float32)

    p = jax.nn.sigmoid(x)
    pt = p * t + (1.0 - p) * (1.0 - t)
    one_minus_pt = 1.0 - pt

    # (1 - pt)**gamma : integer gamma (default 2) stays on the VPU; only a
    # non-integer gamma pays for the exp/log pair inside jnp.power.
    gi = int(gamma)
    if float(gamma) == float(gi) and 0 <= gi <= 8:
        if gi == 0:
            w = jnp.ones_like(one_minus_pt)
        else:
            w = one_minus_pt
            for _ in range(gi - 1):
                w = w * one_minus_pt
    else:
        w = jnp.power(one_minus_pt, jnp.float32(gamma))

    loss = -w * jnp.log(pt + eps)

    # Mask the ragged tail rows of the last block (garbage from Pallas's
    # implicit block padding). Static no-op when the grid divides evenly.
    if mask_tail:
        base = pl.program_id(0) * block_rows
        row = jax.lax.broadcasted_iota(jnp.int32, loss.shape, 0) + base
        loss = jnp.where(row < total_rows, loss, 0.0)

    # Pairwise tree fold (block_rows, C) -> (8, C): same add count as a linear
    # chain but log2 depth, so it cannot become the critical path on v7x.
    r = loss.shape[0]
    while r > 8:
        half = r // 2          # always a multiple of 8 (block_rows = 32*2^k)
        loss = loss[:half] + loss[half:]
        r = half
    o_ref[...] = loss


def _as_2d(a):
    """Canonicalize to 2D by merging leading dims (a free, layout-preserving
    reshape); never touches the minor dim, so no HBM relayout copy."""
    if a.ndim == 0:
        return a.reshape(1, 1)
    if a.ndim == 1:
        return a.reshape(1, a.shape[0])
    if a.ndim == 2:
        return a
    lead = math.prod(a.shape[:-1])
    return a.reshape(lead, a.shape[-1])


def _default_block_byte_budget():
    """Combined bytes of both input blocks per grid step (single buffer)."""
    try:
        kind = jax.devices()[0].device_kind.lower()
    except Exception:
        kind = ""
    if "v6" in kind or "v7" in kind:
        return 8 << 20   # 16 MiB double-buffered: inside the 32 MiB default
    return 4 << 20       # 8 MiB double-buffered: safe on v5e's 16 MiB default


def _choose_block_rows(num_rows, num_cols, bytes_per_row, byte_budget):
    """Rows per grid step: 32 * 2^k, capped by the byte budget, by ~1024 vregs
    per operand (keeps the unrolled vector-op count sane), and by array size."""
    lanes = max(1, -(-num_cols // 128))
    rows_by_vregs = max(32, (1024 // lanes) * 8)
    rows_by_bytes = max(32, byte_budget // max(1, bytes_per_row))
    cap = min(rows_by_vregs, rows_by_bytes)
    bn = 32
    while bn * 2 <= cap:
        bn *= 2
    rows_cap = -(-num_rows // 32) * 32
    while bn > 32 and bn // 2 >= rows_cap:
        bn //= 2
    return bn


def focal_loss(inputs, targets, *, alpha=0.25, gamma=2, eps=1e-10,
               block_bytes=None):
    """Pallas TPU implementation of FocalLoss.forward (returns a scalar).

    `alpha` is accepted for signature parity with the PyTorch module, but (as
    in the reference) it never enters the loss.
    """
    del alpha  # computed-but-unused in the reference torch code
    assert inputs.shape == targets.shape, "input/target shapes must match"

    x2 = _as_2d(inputs)     # native dtype — no wrapper upcast, no relayout
    t2 = _as_2d(targets)
    rows, cols = x2.shape

    if block_bytes is None:
        block_bytes = _default_block_byte_budget()
    bytes_per_row = cols * (x2.dtype.itemsize + t2.dtype.itemsize)
    block_rows = _choose_block_rows(rows, cols, bytes_per_row, block_bytes)

    num_blocks = pl.cdiv(rows, block_rows)
    mask_tail = (rows % block_rows) != 0

    kernel = functools.partial(
        _focal_loss_kernel, gamma=gamma, eps=float(eps), total_rows=rows,
        block_rows=block_rows, mask_tail=mask_tail)

    partials = pl.pallas_call(
        kernel,
        out_shape=jax.ShapeDtypeStruct((num_blocks * 8, cols), jnp.float32),
        grid_spec=pltpu.PrefetchScalarGridSpec(
            num_scalar_prefetch=0,
            grid=(num_blocks,),
            in_specs=[
                pl.BlockSpec((block_rows, cols), lambda i: (i, 0)),
                pl.BlockSpec((block_rows, cols), lambda i: (i, 0)),
            ],
            out_specs=pl.BlockSpec((8, cols), lambda i: (i, 0)),
        ),
        compiler_params=pltpu.CompilerParams(
            # Independent per-block partials: shards across both v7x
            # TensorCores, neutral on single-TC v5e/v6e.
            dimension_semantics=("parallel",),
        ),
    )(x2, t2)

    return jnp.sum(partials)


def focal_loss_ref(inputs, targets, alpha=0.25, gamma=2, eps=1e-10):
    p = jax.nn.sigmoid(inputs)
    pt = p * targets + (1.0 - p) * (1.0 - targets)
    return jnp.sum(-1.0 * jnp.power(1.0 - pt, gamma) * jnp.log(pt + eps))


if __name__ == "__main__":
    key = jax.random.PRNGKey(0)
    k1, k2, k3, k4 = jax.random.split(key, 4)

    # Test 1: the module's natural use — (num_anchors, num_classes) f32 logits
    # against an f32 one-hot target (matches SSDLoss's call into FocalLoss).
    num_anchors, num_classes = 256, 8
    logits = jax.random.normal(k1, (num_anchors, num_classes), dtype=jnp.float32)
    labels = jax.random.randint(k2, (num_anchors,), 0, num_classes)
    targets = jax.nn.one_hot(labels, num_classes, dtype=jnp.float32)

    out = jax.block_until_ready(focal_loss(logits, targets))
    ref = focal_loss_ref(logits, targets)
    assert jnp.allclose(out, ref, rtol=1e-5, atol=1e-5), (out, ref)

    # Test 2: ragged row count + leading-dim merge + narrow (bf16) streaming,
    # exercising the in-kernel tail mask (no wrapper padding / relayout).
    b, n, c = 2, 120, 11
    logits2 = jax.random.normal(k3, (b, n, c), dtype=jnp.float32).astype(jnp.bfloat16)
    labels2 = jax.random.randint(k4, (b, n), 0, c)
    targets2 = jax.nn.one_hot(labels2, c, dtype=jnp.bfloat16)

    out2 = jax.block_until_ready(focal_loss(logits2, targets2))
    ref2 = focal_loss_ref(logits2.astype(jnp.float32), targets2.astype(jnp.float32))
    assert jnp.allclose(out2, ref2, rtol=1e-4, atol=1e-3), (out2, ref2)

    print("KERNEL_OK")
</pallas_src>

<mosaic_0001>
module attributes {stable_mosaic.version = 11 : i64} {
  func.func @_focal_loss_kernel(%arg0: i32, %arg1: memref<256x8xf32, #tpu.memory_space<vmem>>, %arg2: memref<256x8xf32, #tpu.memory_space<vmem>>, %arg3: memref<8x8xf32, #tpu.memory_space<vmem>>) attributes {dimension_semantics = [#tpu.dimension_semantics<parallel>], iteration_bounds = array<i64: 1>, scalar_prefetch = 0 : i64, scratch_operands = 0 : i64, tpu.core_type = #tpu.core_type<tc>, window_params = [{transform_indices = @transform_0, window_bounds = array<i64: 256, 8>}, {transform_indices = @transform_1, window_bounds = array<i64: 256, 8>}, {transform_indices = @transform_2, window_bounds = array<i64: 8, 8>}]} {
    %c0 = arith.constant 0 : index
    %c0_0 = arith.constant 0 : index
    %0 = vector.load %arg1[%c0, %c0_0] : memref<256x8xf32, #tpu.memory_space<vmem>>, vector<256x8xf32>
    %c0_1 = arith.constant 0 : index
    %c0_2 = arith.constant 0 : index
    %1 = vector.load %arg2[%c0_1, %c0_2] : memref<256x8xf32, #tpu.memory_space<vmem>>, vector<256x8xf32>
    %2 = arith.negf %0 : vector<256x8xf32>
    %3 = math.exp %2 : vector<256x8xf32>
    %cst = arith.constant 1.000000e+00 : f32
    %4 = vector.broadcast %cst : f32 to vector<256x8xf32>
    %5 = arith.addf %4, %3 : vector<256x8xf32>
    %6 = arith.divf %4, %5 : vector<256x8xf32>
    %7 = arith.mulf %6, %1 : vector<256x8xf32>
    %cst_3 = arith.constant 1.000000e+00 : f32
    %8 = vector.broadcast %cst_3 : f32 to vector<256x8xf32>
    %9 = arith.subf %8, %6 : vector<256x8xf32>
    %cst_4 = arith.constant 1.000000e+00 : f32
    %10 = vector.broadcast %cst_4 : f32 to vector<256x8xf32>
    %11 = arith.subf %10, %1 : vector<256x8xf32>
    %12 = arith.mulf %9, %11 : vector<256x8xf32>
    %13 = arith.addf %7, %12 : vector<256x8xf32>
    %cst_5 = arith.constant 1.000000e+00 : f32
    %14 = vector.broadcast %cst_5 : f32 to vector<256x8xf32>
    %15 = arith.subf %14, %13 : vector<256x8xf32>
    %16 = arith.mulf %15, %15 : vector<256x8xf32>
    %cst_6 = arith.constant 0.000000e+00 : f32
    %17 = vector.broadcast %cst_6 : f32 to vector<256x8xf32>
    %18 = arith.subf %17, %16 : vector<256x8xf32>
    %cst_7 = arith.constant 1.000000e-10 : f32
    %19 = vector.broadcast %cst_7 : f32 to vector<256x8xf32>
    %20 = arith.addf %13, %19 : vector<256x8xf32>
    %21 = math.log %20 : vector<256x8xf32>
    %22 = arith.mulf %18, %21 : vector<256x8xf32>
    %23 = vector.extract_strided_slice %22 {offsets = [0, 0], sizes = [128, 8], strides = [1, 1]} : vector<256x8xf32> to vector<128x8xf32>
    %24 = vector.extract_strided_slice %22 {offsets = [128, 0], sizes = [128, 8], strides = [1, 1]} : vector<256x8xf32> to vector<128x8xf32>
    %25 = arith.addf %23, %24 : vector<128x8xf32>
    %26 = vector.extract_strided_slice %25 {offsets = [0, 0], sizes = [64, 8], strides = [1, 1]} : vector<128x8xf32> to vector<64x8xf32>
    %27 = vector.extract_strided_slice %25 {offsets = [64, 0], sizes = [64, 8], strides = [1, 1]} : vector<128x8xf32> to vector<64x8xf32>
    %28 = arith.addf %26, %27 : vector<64x8xf32>
    %29 = vector.extract_strided_slice %28 {offsets = [0, 0], sizes = [32, 8], strides = [1, 1]} : vector<64x8xf32> to vector<32x8xf32>
    %30 = vector.extract_strided_slice %28 {offsets = [32, 0], sizes = [32, 8], strides = [1, 1]} : vector<64x8xf32> to vector<32x8xf32>
    %31 = arith.addf %29, %30 : vector<32x8xf32>
    %32 = vector.extract_strided_slice %31 {offsets = [0, 0], sizes = [16, 8], strides = [1, 1]} : vector<32x8xf32> to vector<16x8xf32>
    %33 = vector.extract_strided_slice %31 {offsets = [16, 0], sizes = [16, 8], strides = [1, 1]} : vector<32x8xf32> to vector<16x8xf32>
    %34 = arith.addf %32, %33 : vector<16x8xf32>
    %35 = vector.extract_strided_slice %34 {offsets = [0, 0], sizes = [8, 8], strides = [1, 1]} : vector<16x8xf32> to vector<8x8xf32>
    %36 = vector.extract_strided_slice %34 {offsets = [8, 0], sizes = [8, 8], strides = [1, 1]} : vector<16x8xf32> to vector<8x8xf32>
    %37 = arith.addf %35, %36 : vector<8x8xf32>
    %c0_8 = arith.constant 0 : index
    %c0_9 = arith.constant 0 : index
    %38 = vector.load %arg3[%c0_8, %c0_9] : memref<8x8xf32, #tpu.memory_space<vmem>>, vector<8x8xf32>
    tpu.vector_store %arg3[%c0_8, %c0_9], %37 {strides = array<i32>} : memref<8x8xf32, #tpu.memory_space<vmem>>, vector<8x8xf32>,
    return
  }
  func.func @transform_0(%arg0: i32) -> (i32, i32) {
    %c0_i32 = arith.constant 0 : i32
    %c0_i32_0 = arith.constant 0 : i32
    return %arg0, %c0_i32 : i32, i32
  }
  func.func @transform_1(%arg0: i32) -> (i32, i32) {
    %c0_i32 = arith.constant 0 : i32
    %c0_i32_0 = arith.constant 0 : i32
    return %arg0, %c0_i32 : i32, i32
  }
  func.func @transform_2(%arg0: i32) -> (i32, i32) {
    %c0_i32 = arith.constant 0 : i32
    %c0_i32_0 = arith.constant 0 : i32
    return %arg0, %c0_i32 : i32, i32
  }
}

</mosaic_0001>

<bundles_post_ra>
// kernel: tpu_custom_call.1
= control target key start
LH: loop header
LB: loop body
LE: loop exit
PB: predicated region body
PF: predicated region fallthrough
CT: control target
= control target key end

     0   :  { %7 = vsyncpa [#allocation3], 0  ;;  %vm683_vm0 = vcmask 64512   ;;  %s1873_s0 = inlined_call_operand.vmem [shape: f32[256,8], index: 0, kind: input, shape index: {}]   ;;  %s1874_s1 = inlined_call_operand.vmem [shape: f32[256,8], index: 1, kind: input, shape index: {}]   ;;  %s1875_s2 = inlined_call_operand.hbm [shape: f32[8,8], index: 2, kind: output, shape index: {}]  }
   0x1   :  { %v12_v0 = vld [vmem:[%s1873_s0] sm:$0xff]  ;;  %v13_v1 = vld [vmem:[%s1873_s0 + $0x8] sm:$0xff]  ;;  %v14_v2 = vld [vmem:[%s1873_s0 + $0x10] sm:$0xff] }
   0x2   :  { %v15_v3 = vld [vmem:[%s1873_s0 + $0x18] sm:$0xff]  ;;  %v699_v4 = vmul.f32 -1.442695, %v12_v0  ;;  %v16_v5 = vld [vmem:[%s1873_s0 + $0x20] sm:$0xff]  ;;  %v700_v6 = vmul.f32 -1.442695, %v13_v1 }
   0x3   :  { %v17_v7 = vld [vmem:[%s1873_s0 + $0x28] sm:$0xff]  ;;  %v701_v8 = vmul.f32 -1.442695, %v14_v2  ;;  %v18_v9 = vld [vmem:[%s1873_s0 + $0x30] sm:$0xff]  ;;  %v702_v10 = vmul.f32 -1.442695, %v15_v3 }
   0x4   :  { %v19_v11 = vld [vmem:[%s1873_s0 + $0x38] sm:$0xff]  ;;  %732 = vpow2.f32 %v699_v4  ;;  %v703_v12 = vmul.f32 -1.442695, %v16_v5  ;;  %v20_v13 = vld [vmem:[%s1873_s0 + $0x40] sm:$0xff]  ;;  %v704_v14 = vmul.f32 -1.442695, %v17_v7 }
   0x5   :  { %734 = vpow2.f32 %v700_v6  ;;  %v21_v15 = vld [vmem:[%s1873_s0 + $0x48] sm:$0xff]  ;;  %v705_v16 = vmul.f32 -1.442695, %v18_v9  ;;  %v22_v17 = vld [vmem:[%s1873_s0 + $0x50] sm:$0xff]  ;;  %v706_v18 = vmul.f32 -1.442695, %v19_v11 }
   0x6   :  { %736 = vpow2.f32 %v701_v8  ;;  %v23_v19 = vld [vmem:[%s1873_s0 + $0x58] sm:$0xff]  ;;  %v707_v20 = vmul.f32 -1.442695, %v20_v13  ;;  %v24_v21 = vld [vmem:[%s1873_s0 + $0x60] sm:$0xff]  ;;  %v708_v22 = vmul.f32 -1.442695, %v21_v15 }
   0x7   :  { %738 = vpow2.f32 %v702_v10  ;;  %v25_v23 = vld [vmem:[%s1873_s0 + $0x68] sm:$0xff]  ;;  %v709_v24 = vmul.f32 -1.442695, %v22_v17  ;;  %v26_v25 = vld [vmem:[%s1873_s0 + $0x70] sm:$0xff]  ;;  %v710_v26 = vmul.f32 -1.442695, %v23_v19 }
   0x8   :  { %740 = vpow2.f32 %v703_v12  ;;  %v27_v27 = vld [vmem:[%s1873_s0 + $0x78] sm:$0xff]  ;;  %v711_v28 = vmul.f32 -1.442695, %v24_v21  ;;  %v28_v29 = vld [vmem:[%s1873_s0 + $0x80] sm:$0xff]  ;;  %v712_v30 = vmul.f32 -1.442695, %v25_v23 }
   0x9   :  { %742 = vpow2.f32 %v704_v14  ;;  %v29_v32 = vld [vmem:[%s1873_s0 + $0x88] sm:$0xff]  ;;  %v713_v33 = vmul.f32 -1.442695, %v26_v25  ;;  %v30_v35 = vld [vmem:[%s1873_s0 + $0x90] sm:$0xff]  ;;  %v714_v36 = vmul.f32 -1.442695, %v27_v27 }
   0xa   :  { %744 = vpow2.f32 %v705_v16  ;;  %v31_v38 = vld [vmem:[%s1873_s0 + $0x98] sm:$0xff]  ;;  %v715_v39 = vmul.f32 -1.442695, %v28_v29  ;;  %v32_v41 = vld [vmem:[%s1873_s0 + $0xa0] sm:$0xff]  ;;  %v716_v42 = vmul.f32 -1.442695, %v29_v32 }
   0xb   :  { %746 = vpow2.f32 %v706_v18  ;;  %v33_v44 = vld [vmem:[%s1873_s0 + $0xa8] sm:$0xff]  ;;  %v717_v45 = vmul.f32 -1.442695, %v30_v35  ;;  %v34_v47 = vld [vmem:[%s1873_s0 + $0xb0] sm:$0xff]  ;;  %v718_v48 = vmul.f32 -1.442695, %v31_v38 }
   0xc   :  { %748 = vpow2.f32 %v707_v20  ;;  %v35_v50 = vld [vmem:[%s1873_s0 + $0xb8] sm:$0xff]  ;;  %v719_v51 = vmul.f32 -1.442695, %v32_v41  ;;  %v36_v53 = vld [vmem:[%s1873_s0 + $0xc0] sm:$0xff]  ;;  %v720_v54 = vmul.f32 -1.442695, %v33_v44 }
   0xd   :  { %750 = vpow2.f32 %v708_v22  ;;  %v37_v56 = vld [vmem:[%s1873_s0 + $0xc8] sm:$0xff]  ;;  %v721_v57 = vmul.f32 -1.442695, %v34_v47  ;;  %v38_v59 = vld [vmem:[%s1873_s0 + $0xd0] sm:$0xff]  ;;  %v722_v60 = vmul.f32 -1.442695, %v35_v50 }
   0xe   :  { %v1015_v31 = vpop.eup %732  ;;  %752 = vpow2.f32 %v709_v24  ;;  %v39_v62 = vld [vmem:[%s1873_s0 + $0xd8] sm:$0xff]  ;;  %v723_v63 = vmul.f32 -1.442695, %v36_v53  ;;  %v40_v1 = vld [vmem:[%s1873_s0 + $0xe0] sm:$0xff]  ;;  %v724_v2 = vmul.f32 -1.442695, %v37_v56 }
   0xf   :  { %v1020_v34 = vpop.eup %734  ;;  %754 = vpow2.f32 %v710_v26  ;;  %v41_v4 = vld [vmem:[%s1873_s0 + $0xe8] sm:$0xff]  ;;  %v725_v5 = vmul.f32 -1.442695, %v38_v59  ;;  %v42_v7 = vld [vmem:[%s1873_s0 + $0xf0] sm:$0xff]  ;;  %v726_v8 = vmul.f32 -1.442695, %v39_v62 }
  0x10   :  { %v1025_v37 = vpop.eup %736  ;;  %756 = vpow2.f32 %v711_v28  ;;  %v43_v10 = vld [vmem:[%s1873_s0 + $0xf8] sm:$0xff]  ;;  %v727_v11 = vmul.f32 -1.442695, %v40_v1  ;;  %v1075_v13 = vld [vmem:[%s1874_s1] sm:$0xff]  ;;  %v1080_v14 = vld [vmem:[%s1874_s1 + $0x8] sm:$0xff]  ;;  %v172_v21 = vadd.f32 1.0, %v1015_v31 }
  0x11   :  { %v1030_v40 = vpop.eup %738  ;;  %758 = vpow2.f32 %v712_v30  ;;  %v728_v15 = vmul.f32 -1.442695, %v41_v4  ;;  %v729_v17 = vmul.f32 -1.442695, %v42_v7  ;;  %v730_v19 = vmul.f32 -1.442695, %v43_v10 }
  0x12   :  { %v1035_v43 = vpop.eup %740  ;;  %760 = vpow2.f32 %v713_v33  ;;  %v173_v25 = vadd.f32 1.0, %v1020_v34  ;;  %v174_v26 = vadd.f32 1.0, %v1025_v37  ;;  %v175_v27 = vadd.f32 1.0, %v1030_v40  ;;  %v1093_v29 = vld [vmem:[%s1874_s1 + $0x10] sm:$0xff]  ;;  %v1102_v34 = vld [vmem:[%s1874_s1 + $0x18] sm:$0xff]  ;;  %v1107_v35 = vld [vmem:[%s1874_s1 + $0x20] sm:$0xff] }
  0x13   :  { %v1040_v46 = vpop.eup %742  ;;  %762 = vpow2.f32 %v714_v36  ;;  %v176_v30 = vadd.f32 1.0, %v1035_v43  ;;  %v1116_v40 = vld [vmem:[%s1874_s1 + $0x28] sm:$0xff]  ;;  %v1121_v41 = vld [vmem:[%s1874_s1 + $0x30] sm:$0xff]  ;;  %v1139_v47 = vld [vmem:[%s1874_s1 + $0x40] sm:$0xff] }
  0x14   :  { %v745_v49 = vpop.eup %744  ;;  %764 = vpow2.f32 %v715_v39  ;;  %v177_v31 = vadd.f32 1.0, %v1040_v46  ;;  %v1134_v46 = vld [vmem:[%s1874_s1 + $0x38] sm:$0xff]  ;;  %v1156_v53 = vld [vmem:[%s1874_s1 + $0x50] sm:$0xff]  ;;  %v1172_v59 = vld [vmem:[%s1874_s1 + $0x60] sm:$0xff] }
  0x15   :  { %v747_v52 = vpop.eup %746  ;;  %766 = vpow2.f32 %v716_v42  ;;  %v178_v32 = vadd.f32 1.0, %v745_v49  ;;  %v1188_v1 = vld [vmem:[%s1874_s1 + $0x70] sm:$0xff]  ;;  %v1202_v7 = vld [vmem:[%s1874_s1 + $0x80] sm:$0xff] }
  0x16   :  { %v749_v55 = vpop.eup %748  ;;  %768 = vpow2.f32 %v717_v45  ;;  %v179_v36 = vadd.f32 1.0, %v747_v52  ;;  %v1151_v52 = vld [vmem:[%s1874_s1 + $0x48] sm:$0xff]  ;;  %v1280_v10 = vld [vmem:[%s1874_s1 + $0xd0] sm:$0xff]  ;;  %v1296_v4 = vld [vmem:[%s1874_s1 + $0xe0] sm:$0xff] }
  0x17   :  { %v751_v58 = vpop.eup %750  ;;  %770 = vpow2.f32 %v718_v48  ;;  %v180_v37 = vadd.f32 1.0, %v749_v55  ;;  %1900 = vst [vmem:[#allocation5_spill] sm:$0xff] %v1280_v10  ;;  %1901 = vst [vmem:[#allocation6_spill] sm:$0xff] %v1296_v4  ;;  %v1312_v62 = vld [vmem:[%s1874_s1 + $0xf0] sm:$0xff] }
  0x18   :  { %v753_v61 = vpop.eup %752  ;;  %772 = vpow2.f32 %v719_v51  ;;  %v1109_v38 = vadd.f32 1.0, %v751_v58  ;;  %v1167_v58 = vld [vmem:[%s1874_s1 + $0x58] sm:$0xff]  ;;  %1903 = vst [vmem:[#allocation8_spill] sm:$0xff] %v1312_v62  ;;  %v1907_v62 = vsub.f32 1.0, %v1093_v29 }
  0x19   :  { %v755_v0 = vpop.eup %754  ;;  %774 = vpow2.f32 %v720_v54  ;;  %v1123_v42 = vadd.f32 1.0, %v753_v61  ;;  %v1323_v61 = vld [vmem:[%s1874_s1 + $0xf8] sm:$0xff] }
  0x1a   :  { %v757_v3 = vpop.eup %756  ;;  %776 = vpow2.f32 %v721_v57  ;;  %v1125_v43 = vadd.f32 1.0, %v755_v0  ;;  %v1183_v0 = vld [vmem:[%s1874_s1 + $0x68] sm:$0xff]  ;;  %1904 = vst [vmem:[#allocation9_spill] sm:$0xff] %v1323_v61 }
  0x1b   :  { %v759_v6 = vpop.eup %758  ;;  %778 = vpow2.f32 %v722_v60  ;;  %v1127_v44 = vadd.f32 1.0, %v757_v3  ;;  %v1307_v3 = vld [vmem:[%s1874_s1 + $0xe8] sm:$0xff] }
  0x1c   :  { %v761_v9 = vpop.eup %760  ;;  %780 = vpow2.f32 %v723_v63  ;;  %v1141_v48 = vadd.f32 1.0, %v759_v6  ;;  %v1197_v6 = vld [vmem:[%s1874_s1 + $0x78] sm:$0xff]  ;;  %1902 = vst [vmem:[#allocation7_spill] sm:$0xff] %v1307_v3 }
  0x1d   :  { %v763_v12 = vpop.eup %762  ;;  %782 = vpow2.f32 %v724_v2  ;;  %v1143_v49 = vadd.f32 1.0, %v761_v9  ;;  %v1291_v9 = vld [vmem:[%s1874_s1 + $0xd8] sm:$0xff] }
  0x1e   :  { %v765_v16 = vpop.eup %764  ;;  %784 = vpow2.f32 %v725_v5  ;;  %v1158_v54 = vadd.f32 1.0, %v763_v12  ;;  %v1213_v12 = vld [vmem:[%s1874_s1 + $0x88] sm:$0xff] }
  0x1f   :  { %v767_v18 = vpop.eup %766  ;;  %786 = vpow2.f32 %v726_v8  ;;  %v1174_v60 = vadd.f32 1.0, %v765_v16 }
  0x20   :  { %v769_v20 = vpop.eup %768  ;;  %788 = vpow2.f32 %v727_v11  ;;  %v1190_v2 = vadd.f32 1.0, %v767_v18  ;;  %v1264_v18 = vld [vmem:[%s1874_s1 + $0xc0] sm:$0xff] }
  0x21   :  { %v771_v24 = vpop.eup %770  ;;  %790 = vpow2.f32 %v728_v15  ;;  %v1204_v8 = vadd.f32 1.0, %v769_v20  ;;  %v1218_v15 = vld [vmem:[%s1874_s1 + $0x90] sm:$0xff]  ;;  %v1229_v20 = vld [vmem:[%s1874_s1 + $0x98] sm:$0xff] }
  0x22   :  { %v1088_v28 = vpop.eup %772  ;;  %792 = vpow2.f32 %v729_v17  ;;  %v1220_v16 = vadd.f32 1.0, %v771_v24 }
  0x23   :  { %v1097_v33 = vpop.eup %774  ;;  %794 = vpow2.f32 %v730_v19  ;;  %v1237_v24 = vadd.f32 1.0, %v1088_v28  ;;  %v1275_v28 = vld [vmem:[%s1874_s1 + $0xc8] sm:$0xff] }
  0x24   :  { %v1111_v39 = vpop.eup %776  ;;  %796 = vrcp.f32 %v172_v21  ;;  %v1234_v21 = vld [vmem:[%s1874_s1 + $0xa0] sm:$0xff] }
  0x25   :  { %v1129_v45 = vpop.eup %778  ;;  %798 = vrcp.f32 %v173_v25  ;;  %v1259_v25 = vld [vmem:[%s1874_s1 + $0xb8] sm:$0xff]  ;;  %v1267_v17 = vadd.f32 1.0, %v1111_v39 }
  0x26   :  { %v1146_v51 = vpop.eup %780  ;;  %800 = vrcp.f32 %v174_v26  ;;  %v1283_v39 = vadd.f32 1.0, %v1129_v45 }
  0x27   :  { %v1162_v57 = vpop.eup %782  ;;  %802 = vrcp.f32 %v175_v27  ;;  %v1299_v45 = vadd.f32 1.0, %v1146_v51 }
  0x28   :  { %v1178_v63 = vpop.eup %784  ;;  %804 = vrcp.f32 %v176_v30  ;;  %v1244_v30 = vld [vmem:[%s1874_s1 + $0xa8] sm:$0xff]  ;;  %v1315_v51 = vadd.f32 1.0, %v1162_v57 }
  0x29   :  { %v787_v5 = vpop.eup %786  ;;  %806 = vrcp.f32 %v177_v31  ;;  %v1249_v31 = vld [vmem:[%s1874_s1 + $0xb0] sm:$0xff]  ;;  %v1326_v56 = vadd.f32 1.0, %v1178_v63  ;;  %s948_s1 = smov [#allocation2]  }
  0x2a   :  { %v1208_v11 = vpop.eup %788  ;;  %808 = vrcp.f32 %v178_v32  ;;  %v1252_v32 = vadd.f32 1.0, %v1097_v33  ;;  %v1331_v50 = vadd.f32 1.0, %v787_v5  ;;  %s691_s22 = sshll.u32 %s948_s1, 4  ;;  %s692_s22 = int_to_ptr.vmem [resolvable:$true] %s691_s22 }
  0x2b   :  { %v1224_v19 = vpop.eup %790  ;;  %810 = vrcp.f32 %v179_v36  ;;  %v200_v55 = vadd.f32 1.0, %v1208_v11  ;;  %s924_s23 = scalar_lea.vmem %s692_s22, 128  ;;  %p929_p1 = scmp.lt.s32.totalorder %s692_s22, %s692_s22 }
  0x2c   :  { %v793_v27 = vpop.eup %792  ;;  %812 = vrcp.f32 %v180_v37  ;;  %v201_v37 = vadd.f32 1.0, %v1224_v19  ;;  %p925_p0 = scmp.ne.s32.totalorder %s692_s22, %s924_s23  ;;  %p930_p2 = scmp.lt.s32.totalorder %s924_s23, %s924_s23 }
  0x2d   :  { %v795_v26 = vpop.eup %794  ;;  %814 = vrcp.f32 %v1109_v38 }
  0x2e   :  { %v797_v36 = vpop.eup %796  ;;  %816 = vrcp.f32 %v1123_v42  ;;  %v1345_v4 = vadd.f32 1.0, %v795_v26  ;;  %p931_p3 = por %p930_p2, %p929_p1 }
  0x2f   :  { %v799_v33 = vpop.eup %798  ;;  %818 = vrcp.f32 %v1125_v43  ;;  %v300_v63 = vsub.f32 1.0, %v797_v36  ;;  %v1343_v43 = vadd.f32 1.0, %v793_v27  ;;  %v1905_v27 = vsub.f32 1.0, %v1075_v13 }
  0x30   :  { %v801_v38 = vpop.eup %800  ;;  %820 = vrcp.f32 %v1127_v44  ;;  %v301_v5 = vsub.f32 1.0, %v799_v33  ;;  %p932_p4 = pnand %p931_p3, %p925_p0 }
  0x31   :  { %v803_v42 = vpop.eup %802  ;;  %822 = vrcp.f32 %v1141_v48  ;;  %v1350_v48 = vmul.f32 %v797_v36, %v1075_v13  ;;  %v302_v11 = vsub.f32 1.0, %v801_v38  ;;  %v1357_v19 = vmul.f32 %v801_v38, %v1093_v29 }
  0x32   :  { %v805_v44 = vpop.eup %804  ;;  %824 = vrcp.f32 %v1143_v49  ;;  %v303_v26 = vsub.f32 1.0, %v803_v42 }
  0x33   :  { %v807_v23 = vpop.eup %806  ;;  %826 = vrcp.f32 %v1158_v54  ;;  %v304_v36 = vsub.f32 1.0, %v805_v44  ;;  %v1373_v38 = vmul.f32 %v805_v44, %v1107_v35 }
  0x34   :  { %v809_v57 = vpop.eup %808  ;;  %828 = vrcp.f32 %v1174_v60  ;;  %v1353_v60 = vmul.f32 %v799_v33, %v1080_v14  ;;  %v1906_v33 = vsub.f32 1.0, %v1080_v14  ;;  %v305_v13 = vsub.f32 1.0, %v807_v23 }
  0x35   :  { %v811_v10 = vpop.eup %810  ;;  %830 = vrcp.f32 %v1190_v2  ;;  %v1361_v2 = vmul.f32 %v1905_v27, %v300_v63  ;;  %v306_v63 = vsub.f32 1.0, %v809_v57  ;;  %v1381_v14 = vmul.f32 %v1907_v62, %v302_v11 }
  0x36   :  { %v813_v54 = vpop.eup %812  ;;  %832 = vrcp.f32 %v1204_v8  ;;  %v1365_v8 = vmul.f32 %v803_v42, %v1102_v34  ;;  %v1369_v61 = vmul.f32 %v1906_v33, %v301_v5  ;;  %v307_v42 = vsub.f32 1.0, %v811_v10 }
  0x37   :  { %v815_v49 = vpop.eup %814  ;;  %834 = vrcp.f32 %v1220_v16  ;;  %v308_v44 = vsub.f32 1.0, %v813_v54  ;;  %v1908_v33 = vsub.f32 1.0, %v1102_v34  ;;  %v1909_v62 = vsub.f32 1.0, %v1107_v35 }
  0x38   :  { %v817_v22 = vpop.eup %816  ;;  %836 = vrcp.f32 %v1237_v24  ;;  %v1377_v24 = vmul.f32 %v807_v23, %v1116_v40  ;;  %v1393_v23 = vmul.f32 %v811_v10, %v1134_v46  ;;  %v309_v29 = vsub.f32 1.0, %v815_v49 }
  0x39   :  { %v819_v16 = vpop.eup %818  ;;  %838 = vrcp.f32 %v1252_v32  ;;  %v1385_v32 = vmul.f32 %v809_v57, %v1121_v41  ;;  %v1389_v3 = vmul.f32 %v1908_v33, %v303_v26  ;;  %v1397_v11 = vmul.f32 %v1909_v62, %v304_v36 }
  0x3a   :  { %v821_v27 = vpop.eup %820  ;;  %840 = vrcp.f32 %v1267_v17  ;;  %v1401_v57 = vmul.f32 %v813_v54, %v1139_v47  ;;  %v1910_v34 = vsub.f32 1.0, %v1116_v40  ;;  %v1413_v35 = vmul.f32 %v815_v49, %v1151_v52 }
  0x3b   :  { %v823_v5 = vpop.eup %822  ;;  %842 = vrcp.f32 %v1283_v39  ;;  %v310_v36 = vsub.f32 1.0, %v817_v22  ;;  %v1421_v40 = vmul.f32 %v817_v22, %v1156_v53  ;;  %v1428_v49 = vmul.f32 %v819_v16, %v1167_v58 }
  0x3c   :  { %v825_v17 = vpop.eup %824  ;;  %844 = vrcp.f32 %v1299_v45  ;;  %v1405_v26 = vmul.f32 %v1910_v34, %v305_v13  ;;  %v1911_v45 = vsub.f32 1.0, %v1121_v41  ;;  %v311_v41 = vsub.f32 1.0, %v819_v16 }
  0x3d   :  { %v827_v39 = vpop.eup %826  ;;  %846 = vrcp.f32 %v1315_v51  ;;  %v1912_v51 = vsub.f32 1.0, %v1134_v46  ;;  %v1913_v13 = vsub.f32 1.0, %v1139_v47  ;;  %1914 = vst [vmem:[#allocation10_spill] sm:$0xff] %v1428_v49  ;;  %v312_v34 = vsub.f32 1.0, %v821_v27 }
  0x3e   :  { %v1409_v33 = vmul.f32 %v1911_v45, %v306_v63  ;;  %v829_v10 = vpop.eup %828  ;;  %848 = vrcp.f32 %v1326_v56  ;;  %v1915_v46 = vsub.f32 1.0, %v1151_v52  ;;  %v1435_v22 = vmul.f32 %v821_v27, %v1172_v59 }
  0x3f   :  { %v1417_v62 = vmul.f32 %v1912_v51, %v307_v42  ;;  %v831_v54 = vpop.eup %830  ;;  %850 = vrcp.f32 %v1331_v50  ;;  %v1425_v63 = vmul.f32 %v1913_v13, %v308_v44  ;;  %v313_v50 = vsub.f32 1.0, %v823_v5 }
  0x40   :  { %v833_v56 = vpop.eup %832  ;;  %852 = vrcp.f32 %v200_v55  ;;  %v1432_v42 = vmul.f32 %v1915_v46, %v309_v29  ;;  %1916 = vst [vmem:[#allocation11_spill] sm:$0xff] %v1435_v22  ;;  %v314_v51 = vsub.f32 1.0, %v825_v17  ;;  %v1439_v55 = vmul.f32 %v823_v5, %v1183_v0 }
  0x41   :  { %v835_v45 = vpop.eup %834  ;;  %854 = vrcp.f32 %v201_v37  ;;  %v315_v16 = vsub.f32 1.0, %v827_v39  ;;  %v1918_v44 = vsub.f32 1.0, %v1156_v53  ;;  %v316_v37 = vsub.f32 1.0, %v829_v10 }
  0x42   :  { %v837_v47 = vpop.eup %836  ;;  %856 = vrcp.f32 %v1343_v43  ;;  %1917 = vst [vmem:[#allocation12_spill] sm:$0xff] %v1439_v55  ;;  %v317_v29 = vsub.f32 1.0, %v831_v54  ;;  %v1919_v27 = vsub.f32 1.0, %v1167_v58  ;;  %v1451_v43 = vmul.f32 %v825_v17, %v1188_v1 }
  0x43   :  { %v1443_v13 = vmul.f32 %v1918_v44, %v310_v36  ;;  %v839_v52 = vpop.eup %838  ;;  %858 = vrcp.f32 %v1345_v4  ;;  %v1454_v5 = vmul.f32 %v827_v39, %v1197_v6  ;;  %v318_v55 = vsub.f32 1.0, %v833_v56 }
  0x44   :  { %v1448_v46 = vmul.f32 %v1919_v27, %v311_v41  ;;  %v841_v22 = vpop.eup %840  ;;  %v1921_v53 = vsub.f32 1.0, %v1172_v59  ;;  %v1461_v4 = vmul.f32 %v829_v10, %v1202_v7  ;;  %v319_v49 = vsub.f32 1.0, %v835_v45 }
  0x45   :  { %1920 = vst [vmem:[#allocation13_spill] sm:$0xff] %v1454_v5  ;;  %v843_v44 = vpop.eup %842  ;;  %v1923_v58 = vsub.f32 1.0, %v1183_v0  ;;  %v1924_v17 = vsub.f32 1.0, %v1188_v1  ;;  %v1472_v5 = vmul.f32 %v831_v54, %v1213_v12  ;;  %v1475_v59 = vmul.f32 %v833_v56, %v1218_v15 }
  0x46   :  { %v1458_v36 = vmul.f32 %v1921_v53, %v312_v34  ;;  %1922 = vst [vmem:[#allocation14_spill] sm:$0xff] %v1461_v4  ;;  %v845_v39 = vpop.eup %844  ;;  %v320_v34 = vsub.f32 1.0, %v837_v47  ;;  %v1927_v10 = vsub.f32 1.0, %v1197_v6  ;;  %v1482_v0 = vmul.f32 %v835_v45, %v1229_v20 }
  0x47   :  { %v1465_v41 = vmul.f32 %v1923_v58, %v313_v50  ;;  %v1469_v27 = vmul.f32 %v1924_v17, %v314_v51  ;;  %1925 = vst [vmem:[#allocation15_spill] sm:$0xff] %v1472_v5  ;;  %1926 = vst [vmem:[#allocation16_spill] sm:$0xff] %v1475_v59  ;;  %v847_v4 = vpop.eup %846  ;;  %v321_v50 = vsub.f32 1.0, %v839_v52  ;;  %v1930_v1 = vsub.f32 1.0, %v1202_v7 }
  0x48   :  { %v1479_v53 = vmul.f32 %v1927_v10, %v315_v16  ;;  %1929 = vst [vmem:[#allocation18_spill] sm:$0xff] %v1482_v0  ;;  %v1931_v58 = vsub.f32 1.0, %v1213_v12  ;;  %v849_v17 = vpop.eup %848  ;;  %v288_v56 = vmul.f32 %v837_v47, %v1234_v21  ;;  %v289_v59 = vmul.f32 %v839_v52, %v1244_v30 }
  0x49   :  { %v380_v51 = vmul.f32 %v1930_v1, %v316_v37  ;;  %v322_v5 = vsub.f32 1.0, %v841_v22  ;;  %v1932_v6 = vsub.f32 1.0, %v1218_v15  ;;  %v851_v10 = vpop.eup %850  ;;  %v290_v45 = vmul.f32 %v841_v22, %v1249_v31 }
  0x4a   :  { %1928 = vst [vmem:[#allocation17_spill] sm:$0xff] %v1479_v53  ;;  %v381_v54 = vmul.f32 %v1931_v58, %v317_v29  ;;  %v323_v0 = vsub.f32 1.0, %v843_v44  ;;  %v1933_v53 = vsub.f32 1.0, %v1229_v20  ;;  %v1497_v12 = vadd.f32 %v1361_v2, %v1350_v48  ;;  %v853_v37 = vpop.eup %852 }
  0x4b   :  { %v382_v16 = vmul.f32 %v1932_v6, %v318_v55  ;;  %v291_v47 = vmul.f32 %v843_v44, %v1259_v25  ;;  %v324_v29 = vsub.f32 1.0, %v845_v39  ;;  %v1934_v52 = vsub.f32 1.0, %v1234_v21  ;;  %v855_v22 = vpop.eup %854 }
  0x4c   :  { %v383_v7 = vmul.f32 %v1933_v53, %v319_v49  ;;  %v1504_v15 = vadd.f32 %v1369_v61, %v1353_v60  ;;  %v292_v55 = vmul.f32 %v845_v39, %v1264_v18  ;;  %v325_v20 = vsub.f32 1.0, %v847_v4  ;;  %v857_v2 = vpop.eup %856  ;;  %v1937_v39 = vld [vmem:[#allocation5_spill] sm:$0xff] }
  0x4d   :  { %v384_v1 = vmul.f32 %v1934_v52, %v320_v34  ;;  %v1935_v49 = vsub.f32 1.0, %v1244_v30  ;;  %v1511_v48 = vadd.f32 %v1381_v14, %v1357_v19  ;;  %v293_v44 = vmul.f32 %v847_v4, %v1275_v28  ;;  %v859_v60 = vpop.eup %858 }
  0x4e   :  { %v326_v21 = vsub.f32 1.0, %v849_v17  ;;  %v1936_v34 = vsub.f32 1.0, %v1249_v31  ;;  %v1518_v61 = vadd.f32 %v1389_v3, %v1365_v8  ;;  %v294_v6 = vmul.f32 %v849_v17, %v1937_v39 }
  0x4f   :  { %v385_v53 = vmul.f32 %v1935_v49, %v321_v50  ;;  %v327_v30 = vsub.f32 1.0, %v851_v10  ;;  %v1938_v50 = vsub.f32 1.0, %v1259_v25  ;;  %v1525_v19 = vadd.f32 %v1397_v11, %v1373_v38  ;;  %v1941_v38 = vld [vmem:[#allocation6_spill] sm:$0xff] }
  0x50   :  { %v386_v58 = vmul.f32 %v1936_v34, %v322_v5  ;;  %v328_v14 = vsub.f32 1.0, %v853_v37  ;;  %v329_v4 = vsub.f32 1.0, %v855_v22  ;;  %v1939_v31 = vsub.f32 1.0, %v1264_v18 }
  0x51   :  { %v387_v52 = vmul.f32 %v1938_v50, %v323_v0  ;;  %v1531_v3 = vadd.f32 %v1405_v26, %v1377_v24  ;;  %v295_v8 = vmul.f32 %v851_v10, %v1291_v9  ;;  %v330_v17 = vsub.f32 1.0, %v857_v2  ;;  %v1943_v26 = vld [vmem:[#allocation7_spill] sm:$0xff]  ;;  %v1944_v50 = vld [vmem:[#allocation8_spill] sm:$0xff] }
  0x52   :  { %v388_v5 = vmul.f32 %v1939_v31, %v324_v29  ;;  %v1940_v49 = vsub.f32 1.0, %v1275_v28  ;;  %v1538_v0 = vadd.f32 %v1409_v33, %v1385_v32  ;;  %v296_v11 = vmul.f32 %v853_v37, %v1941_v38  ;;  %v1946_v33 = vld [vmem:[#allocation9_spill] sm:$0xff] }
  0x53   :  { %v331_v34 = vsub.f32 1.0, %v859_v60  ;;  %v1942_v18 = vsub.f32 1.0, %v1937_v39  ;;  %v1545_v24 = vadd.f32 %v1417_v62, %v1393_v23  ;;  %v297_v10 = vmul.f32 %v855_v22, %v1943_v26 }
  0x54   :  { %v389_v25 = vmul.f32 %v1940_v49, %v325_v20  ;;  %v298_v31 = vmul.f32 %v857_v2, %v1944_v50  ;;  %v1945_v28 = vsub.f32 1.0, %v1291_v9  ;;  %v1553_v32 = vadd.f32 %v1425_v63, %v1401_v57  ;;  %v1950_v57 = vld [vmem:[#allocation10_spill] sm:$0xff] }
  0x55   :  { %v390_v29 = vmul.f32 %v1942_v18, %v326_v21  ;;  %v299_v37 = vmul.f32 %v859_v60, %v1946_v33  ;;  %v1947_v39 = vsub.f32 1.0, %v1941_v38  ;;  %v1948_v49 = vsub.f32 1.0, %v1943_v26  ;;  %v1951_v60 = vld [vmem:[#allocation11_spill] sm:$0xff] }
  0x56   :  { %v391_v20 = vmul.f32 %v1945_v28, %v327_v30  ;;  %v1562_v62 = vadd.f32 %v1432_v42, %v1413_v35  ;;  %v1949_v22 = vsub.f32 1.0, %v1944_v50  ;;  %v1568_v2 = vadd.f32 %v1443_v13, %v1421_v40  ;;  %v1953_v35 = vld [vmem:[#allocation12_spill] sm:$0xff]  ;;  %v1954_v40 = vld [vmem:[#allocation13_spill] sm:$0xff]  ;;  %v1959_v28 = vld [vmem:[#allocation18_spill] sm:$0xff] }
  0x57   :  { %v392_v21 = vmul.f32 %v1947_v39, %v328_v14  ;;  %v393_v23 = vmul.f32 %v1948_v49, %v329_v4  ;;  %v1572_v63 = vadd.f32 %v1448_v46, %v1950_v57  ;;  %v1576_v30 = vadd.f32 %v1458_v36, %v1951_v60  ;;  %v1955_v13 = vld [vmem:[#allocation17_spill] sm:$0xff]  ;;  %v1956_v46 = vld [vmem:[#allocation14_spill] sm:$0xff]  ;;  %v1957_v36 = vld [vmem:[#allocation15_spill] sm:$0xff] }
  0x58   :  { %v394_v9 = vmul.f32 %v1949_v22, %v330_v17  ;;  %v1952_v14 = vsub.f32 1.0, %v1946_v33  ;;  %v1582_v42 = vadd.f32 %v1465_v41, %v1953_v35  ;;  %v1586_v17 = vadd.f32 %v1469_v27, %v1451_v43  ;;  %v1958_v50 = vld [vmem:[#allocation16_spill] sm:$0xff] }
  0x59   :  { %v1590_v38 = vadd.f32 %v1955_v13, %v1954_v40  ;;  %v1593_v18 = vadd.f32 %v380_v51, %v1956_v46  ;;  %v1596_v26 = vadd.f32 %v381_v54, %v1957_v36  ;;  %v1602_v41 = vadd.f32 %v383_v7, %v1959_v28 }
  0x5a   :  { %v395_v4 = vmul.f32 %v1952_v14, %v331_v34  ;;  %v1599_v34 = vadd.f32 %v382_v16, %v1958_v50  ;;  %v1604_v33 = vadd.f32 %v384_v1, %v288_v56  ;;  %v1606_v43 = vadd.f32 %v385_v53, %v289_v59 }
  0x5b   :  { %v1608_v27 = vadd.f32 %v386_v58, %v290_v45  ;;  %v1610_v39 = vadd.f32 %v387_v52, %v291_v47  ;;  %v1612_v49 = vadd.f32 %v388_v5, %v292_v55  ;;  %v1614_v51 = vadd.f32 %v389_v25, %v293_v44 }
  0x5c   :  { %1960 = vst [vmem:[#allocation5_spill] sm:$0xff] %v1606_v43  ;;  %v1616_v54 = vadd.f32 %v390_v29, %v294_v6  ;;  %v1618_v22 = vadd.f32 %v391_v20, %v295_v8  ;;  %v1620_v16 = vadd.f32 %v392_v21, %v296_v11  ;;  %v1622_v7 = vadd.f32 %v393_v23, %v297_v10 }
  0x5d   :  { %1961 = vst [vmem:[#allocation6_spill] sm:$0xff] %v1608_v27  ;;  %1962 = vst [vmem:[#allocation7_spill] sm:$0xff] %v1610_v39  ;;  %v1624_v56 = vadd.f32 %v394_v9, %v298_v31  ;;  %v1626_v59 = vadd.f32 %v395_v4, %v299_v37  ;;  %v428_v45 = vsub.f32 1.0, %v1497_v12  ;;  %v429_v47 = vsub.f32 1.0, %v1504_v15 }
  0x5e   :  { %1963 = vst [vmem:[#allocation8_spill] sm:$0xff] %v1612_v49  ;;  %1964 = vst [vmem:[#allocation9_spill] sm:$0xff] %v1614_v51  ;;  %v430_v1 = vsub.f32 1.0, %v1511_v48  ;;  %v431_v55 = vsub.f32 1.0, %v1518_v61  ;;  %v432_v53 = vsub.f32 1.0, %v1525_v19  ;;  %v433_v44 = vsub.f32 1.0, %v1531_v3 }
  0x5f   :  { %1965 = vst [vmem:[#allocation10_spill] sm:$0xff] %v1616_v54  ;;  %1966 = vst [vmem:[#allocation11_spill] sm:$0xff] %v1618_v22  ;;  %v434_v58 = vsub.f32 1.0, %v1538_v0  ;;  %v435_v6 = vsub.f32 1.0, %v1545_v24  ;;  %v436_v52 = vsub.f32 1.0, %v1553_v32  ;;  %v437_v5 = vsub.f32 1.0, %v1562_v62 }
  0x60   :  { %1967 = vst [vmem:[#allocation12_spill] sm:$0xff] %v1620_v16  ;;  %1968 = vst [vmem:[#allocation13_spill] sm:$0xff] %v1622_v7  ;;  %v438_v8 = vsub.f32 1.0, %v1568_v2  ;;  %v439_v25 = vsub.f32 1.0, %v1572_v63  ;;  %v440_v11 = vsub.f32 1.0, %v1576_v30  ;;  %v441_v29 = vsub.f32 1.0, %v1582_v42 }
  0x61   :  { %1969 = vst [vmem:[#allocation17_spill] sm:$0xff] %v1624_v56  ;;  %v442_v10 = vsub.f32 1.0, %v1586_v17  ;;  %v443_v31 = vsub.f32 1.0, %v1590_v38  ;;  %v444_v20 = vsub.f32 1.0, %v1593_v18  ;;  %v445_v37 = vsub.f32 1.0, %v1596_v26 }
  0x62   :  { %v446_v21 = vsub.f32 1.0, %v1599_v34  ;;  %v447_v23 = vsub.f32 1.0, %v1602_v41  ;;  %v448_v9 = vsub.f32 1.0, %v1604_v33  ;;  %v449_v57 = vsub.f32 1.0, %v1606_v43 }
  0x63   :  { %v450_v60 = vsub.f32 1.0, %v1608_v27  ;;  %v451_v14 = vsub.f32 1.0, %v1610_v39  ;;  %v452_v4 = vsub.f32 1.0, %v1612_v49  ;;  %v453_v35 = vsub.f32 1.0, %v1614_v51 }
  0x64   :  { %v454_v40 = vsub.f32 1.0, %v1616_v54  ;;  %v455_v13 = vsub.f32 1.0, %v1618_v22  ;;  %v456_v46 = vsub.f32 1.0, %v1620_v16  ;;  %v457_v36 = vsub.f32 1.0, %v1622_v7 }
  0x65   :  { %v458_v50 = vsub.f32 1.0, %v1624_v56  ;;  %v459_v28 = vsub.f32 1.0, %v1626_v59  ;;  %v1660_v43 = vmul.f32 %v428_v45, %v428_v45  ;;  %v1662_v27 = vmul.f32 %v429_v47, %v429_v47 }
  0x66   :  { %v1664_v39 = vmul.f32 %v430_v1, %v430_v1  ;;  %v1666_v49 = vmul.f32 %v431_v55, %v431_v55  ;;  %v1668_v51 = vmul.f32 %v432_v53, %v432_v53  ;;  %v1670_v54 = vmul.f32 %v433_v44, %v433_v44 }
  0x67   :  { %v1672_v22 = vmul.f32 %v434_v58, %v434_v58  ;;  %v1674_v16 = vmul.f32 %v435_v6, %v435_v6  ;;  %v1676_v7 = vmul.f32 %v436_v52, %v436_v52  ;;  %v1678_v56 = vmul.f32 %v437_v5, %v437_v5 }
  0x68   :  { %v1680_v45 = vmul.f32 %v438_v8, %v438_v8  ;;  %v1682_v47 = vmul.f32 %v439_v25, %v439_v25  ;;  %v1684_v1 = vmul.f32 %v440_v11, %v440_v11  ;;  %v1686_v55 = vmul.f32 %v441_v29, %v441_v29 }
  0x69   :  { %v1688_v53 = vmul.f32 %v442_v10, %v442_v10  ;;  %v1690_v44 = vmul.f32 %v443_v31, %v443_v31  ;;  %v1692_v58 = vmul.f32 %v444_v20, %v444_v20  ;;  %v1694_v6 = vmul.f32 %v445_v37, %v445_v37 }
  0x6a   :  { %v1696_v52 = vmul.f32 %v446_v21, %v446_v21  ;;  %v1698_v5 = vmul.f32 %v447_v23, %v447_v23  ;;  %v1700_v8 = vmul.f32 %v448_v9, %v448_v9  ;;  %v1702_v25 = vmul.f32 %v449_v57, %v449_v57 }
  0x6b   :  { %v1704_v11 = vmul.f32 %v450_v60, %v450_v60  ;;  %v524_v29 = vadd.f32 1e-10, %v1497_v12  ;;  %v1707_v10 = vmul.f32 %v451_v14, %v451_v14  ;;  %v525_v31 = vadd.f32 1e-10, %v1504_v15 }
  0x6c   :  { %v526_v20 = vadd.f32 1e-10, %v1511_v48  ;;  %v527_v37 = vadd.f32 1e-10, %v1518_v61  ;;  %v1712_v21 = vmul.f32 %v452_v4, %v452_v4  ;;  %v1714_v23 = vmul.f32 %v453_v35, %v453_v35 }
  0x6d   :  { %v528_v9 = vadd.f32 1e-10, %v1525_v19  ;;  %860 = vlog2.f32 %v524_v29  ;;  %v1717_v57 = vmul.f32 %v454_v40, %v454_v40  ;;  %v1719_v60 = vmul.f32 %v455_v13, %v455_v13  ;;  %v1975_v29 = vld [vmem:[#allocation6_spill] sm:$0xff] }
  0x6e   :  { %v529_v12 = vadd.f32 1e-10, %v1531_v3  ;;  %862 = vlog2.f32 %v525_v31  ;;  %v1722_v14 = vmul.f32 %v456_v46, %v456_v46  ;;  %v1724_v15 = vmul.f32 %v457_v36, %v457_v36  ;;  %v1979_v46 = vld [vmem:[#allocation10_spill] sm:$0xff] }
  0x6f   :  { %v530_v48 = vadd.f32 1e-10, %v1538_v0  ;;  %864 = vlog2.f32 %v526_v20  ;;  %v1727_v61 = vmul.f32 %v458_v50, %v458_v50  ;;  %v1729_v4 = vmul.f32 %v459_v28, %v459_v28  ;;  %v1976_v28 = vld [vmem:[#allocation7_spill] sm:$0xff]  ;;  %v1977_v50 = vld [vmem:[#allocation8_spill] sm:$0xff] }
  0x70   :  { %1970 = vst [vmem:[#allocation14_spill] sm:$0xff] %v1722_v14  ;;  %1971 = vst [vmem:[#allocation15_spill] sm:$0xff] %v1724_v15  ;;  %v531_v19 = vadd.f32 1e-10, %v1545_v24  ;;  %866 = vlog2.f32 %v527_v37  ;;  %v532_v3 = vadd.f32 1e-10, %v1553_v32 }
  0x71   :  { %1972 = vst [vmem:[#allocation16_spill] sm:$0xff] %v1727_v61  ;;  %1973 = vst [vmem:[#allocation18_spill] sm:$0xff] %v1729_v4  ;;  %868 = vlog2.f32 %v528_v9  ;;  %v533_v0 = vadd.f32 1e-10, %v1562_v62  ;;  %v534_v24 = vadd.f32 1e-10, %v1568_v2 }
  0x72   :  { %870 = vlog2.f32 %v529_v12  ;;  %v535_v32 = vadd.f32 1e-10, %v1572_v63  ;;  %v536_v62 = vadd.f32 1e-10, %v1576_v30  ;;  %v537_v2 = vadd.f32 1e-10, %v1582_v42 }
  0x73   :  { %872 = vlog2.f32 %v530_v48  ;;  %v540_v48 = vadd.f32 1e-10, %v1593_v18  ;;  %v541_v20 = vadd.f32 1e-10, %v1596_v26  ;;  %v542_v37 = vadd.f32 1e-10, %v1599_v34 }
  0x74   :  { %874 = vlog2.f32 %v531_v19  ;;  %v538_v19 = vadd.f32 1e-10, %v1586_v17  ;;  %v543_v17 = vadd.f32 1e-10, %v1602_v41  ;;  %v1974_v42 = vld [vmem:[#allocation5_spill] sm:$0xff] }
  0x75   :  { %876 = vlog2.f32 %v532_v3  ;;  %v539_v3 = vadd.f32 1e-10, %v1590_v38  ;;  %v544_v38 = vadd.f32 1e-10, %v1604_v33  ;;  %v545_v18 = vadd.f32 1e-10, %v1974_v42 }
  0x76   :  { %878 = vlog2.f32 %v533_v0  ;;  %v546_v26 = vadd.f32 1e-10, %v1975_v29  ;;  %v547_v34 = vadd.f32 1e-10, %v1976_v28  ;;  %v548_v42 = vadd.f32 1e-10, %v1977_v50 }
  0x77   :  { %v861_v12 = vpop.eup %860  ;;  %880 = vlog2.f32 %v534_v24  ;;  %v550_v41 = vadd.f32 1e-10, %v1979_v46  ;;  %v1980_v33 = vld [vmem:[#allocation11_spill] sm:$0xff]  ;;  %v1982_v46 = vld [vmem:[#allocation13_spill] sm:$0xff] }
  0x78   :  { %v863_v31 = vpop.eup %862  ;;  %882 = vlog2.f32 %v535_v32  ;;  %v557_v13 = vmul.f32 0.6931472, %v861_v12  ;;  %v551_v35 = vadd.f32 1e-10, %v1980_v33  ;;  %v1983_v14 = vld [vmem:[#allocation17_spill] sm:$0xff] }
  0x79   :  { %v865_v9 = vpop.eup %864  ;;  %884 = vlog2.f32 %v536_v62  ;;  %v559_v29 = vmul.f32 0.6931472, %v863_v31  ;;  %v554_v12 = vadd.f32 1e-10, %v1983_v14  ;;  %v555_v31 = vadd.f32 1e-10, %v1626_v59 }
  0x7a   :  { %v867_v63 = vpop.eup %866  ;;  %886 = vlog2.f32 %v537_v2  ;;  %v1988_v59 = vsub.f32 0.0, %v1668_v51 }
  0x7b   :  { %v869_v30 = vpop.eup %868  ;;  %888 = vlog2.f32 %v538_v19 }
  0x7c   :  { %v871_v0 = vpop.eup %870  ;;  %890 = vlog2.f32 %v539_v3  ;;  %v565_v4 = vmul.f32 0.6931472, %v869_v30 }
  0x7d   :  { %v873_v24 = vpop.eup %872  ;;  %892 = vlog2.f32 %v540_v48  ;;  %v563_v48 = vmul.f32 0.6931472, %v867_v63  ;;  %v567_v50 = vmul.f32 0.6931472, %v871_v0  ;;  %v1984_v63 = vsub.f32 0.0, %v1660_v43 }
  0x7e   :  { %v875_v32 = vpop.eup %874  ;;  %894 = vlog2.f32 %v541_v20  ;;  %v1978_v20 = vld [vmem:[#allocation9_spill] sm:$0xff]  ;;  %v569_v15 = vmul.f32 0.6931472, %v873_v24  ;;  %v1986_v0 = vsub.f32 0.0, %v1664_v39  ;;  %v1989_v43 = vsub.f32 0.0, %v1670_v54 }
  0x7f   :  { %v877_v62 = vpop.eup %876  ;;  %896 = vlog2.f32 %v542_v37  ;;  %v549_v36 = vadd.f32 1e-10, %v1978_v20  ;;  %v561_v37 = vmul.f32 0.6931472, %v865_v9  ;;  %v620_v30 = vmul.f32 %v557_v13, %v1984_v63 }
  0x80   :  { %v879_v2 = vpop.eup %878  ;;  %898 = vlog2.f32 %v543_v17  ;;  %v1981_v17 = vld [vmem:[#allocation12_spill] sm:$0xff]  ;;  %v571_v33 = vmul.f32 0.6931472, %v875_v32  ;;  %v1990_v39 = vsub.f32 0.0, %v1672_v22 }
  0x81   :  { %v881_v19 = vpop.eup %880  ;;  %900 = vlog2.f32 %v544_v38  ;;  %v552_v61 = vadd.f32 1e-10, %v1981_v17  ;;  %v553_v38 = vadd.f32 1e-10, %v1982_v46  ;;  %v622_v24 = vmul.f32 %v561_v37, %v1986_v0 }
  0x82   :  { %v883_v3 = vpop.eup %882  ;;  %902 = vlog2.f32 %v545_v18  ;;  %v1985_v18 = vsub.f32 0.0, %v1662_v27  ;;  %v1987_v17 = vsub.f32 0.0, %v1666_v49  ;;  %v573_v46 = vmul.f32 0.6931472, %v877_v62 }
  0x83   :  { %v885_v40 = vpop.eup %884  ;;  %904 = vlog2.f32 %v546_v26  ;;  %v1802_v27 = vmul.f32 %v567_v50, %v1989_v43  ;;  %v1806_v13 = vmul.f32 %v569_v15, %v1990_v39  ;;  %v577_v51 = vmul.f32 0.6931472, %v881_v19 }
  0x84   :  { %v887_v28 = vpop.eup %886  ;;  %906 = vlog2.f32 %v547_v34  ;;  %v621_v26 = vmul.f32 %v559_v29, %v1985_v18  ;;  %v623_v14 = vmul.f32 %v563_v48, %v1987_v17  ;;  %v1991_v15 = vsub.f32 0.0, %v1674_v16 }
  0x85   :  { %v889_v20 = vpop.eup %888  ;;  %908 = vlog2.f32 %v548_v42  ;;  %v1798_v42 = vmul.f32 %v565_v4, %v1988_v59  ;;  %v579_v4 = vmul.f32 0.6931472, %v883_v3  ;;  %v583_v63 = vmul.f32 0.6931472, %v887_v28 }
  0x86   :  { %v891_v9 = vpop.eup %890  ;;  %910 = vlog2.f32 %v549_v36  ;;  %v585_v18 = vmul.f32 0.6931472, %v889_v20  ;;  %v1993_v19 = vsub.f32 0.0, %v1678_v56  ;;  %v1995_v28 = vsub.f32 0.0, %v1694_v6 }
  0x87   :  { %v893_v34 = vpop.eup %892  ;;  %912 = vlog2.f32 %v550_v41  ;;  %v575_v41 = vmul.f32 0.6931472, %v879_v2  ;;  %v587_v22 = vmul.f32 0.6931472, %v891_v9  ;;  %v627_v2 = vmul.f32 %v571_v33, %v1991_v15 }
  0x88   :  { %v895_v36 = vpop.eup %894  ;;  %914 = vlog2.f32 %v551_v35  ;;  %v589_v29 = vmul.f32 0.6931472, %v893_v34  ;;  %v581_v35 = vmul.f32 0.6931472, %v885_v40  ;;  %v1997_v16 = vsub.f32 0.0, %v1682_v47 }
  0x89   :  { %v897_v32 = vpop.eup %896  ;;  %v591_v49 = vmul.f32 0.6931472, %v895_v36  ;;  %916 = vlog2.f32 %v552_v61  ;;  %v1992_v61 = vsub.f32 0.0, %v1676_v7  ;;  %v629_v3 = vmul.f32 %v575_v41, %v1993_v19 }
  0x8a   :  { %v899_v48 = vpop.eup %898  ;;  %v593_v37 = vmul.f32 0.6931472, %v897_v32  ;;  %918 = vlog2.f32 %v553_v38  ;;  %v1994_v38 = vsub.f32 0.0, %v1692_v58  ;;  %v631_v33 = vmul.f32 %v579_v4, %v1997_v16 }
  0x8b   :  { %v901_v62 = vpop.eup %900  ;;  %v595_v54 = vmul.f32 0.6931472, %v899_v48  ;;  %920 = vlog2.f32 %v554_v12  ;;  %v628_v34 = vmul.f32 %v573_v46, %v1992_v61  ;;  %v637_v12 = vmul.f32 %v591_v49, %v1995_v28 }
  0x8c   :  { %v903_v50 = vpop.eup %902  ;;  %922 = vlog2.f32 %v555_v31  ;;  %v636_v40 = vmul.f32 %v589_v29, %v1994_v38  ;;  %v597_v20 = vmul.f32 0.6931472, %v901_v62  ;;  %v1996_v31 = vsub.f32 0.0, %v1680_v45 }
  0x8d   :  { %v905_v0 = vpop.eup %904  ;;  %v1998_v7 = vsub.f32 0.0, %v1696_v52  ;;  %v599_v56 = vmul.f32 0.6931472, %v903_v50  ;;  %v1999_v46 = vsub.f32 0.0, %v1684_v1  ;;  %v2000_v43 = vsub.f32 0.0, %v1686_v55 }
  0x8e   :  { %v907_v17 = vpop.eup %906  ;;  %v630_v9 = vmul.f32 %v577_v51, %v1996_v31  ;;  %v2001_v39 = vsub.f32 0.0, %v1698_v5  ;;  %v601_v45 = vmul.f32 0.6931472, %v905_v0  ;;  %v2002_v47 = vsub.f32 0.0, %v1688_v53 }
  0x8f   :  { %v638_v59 = vmul.f32 %v593_v37, %v1998_v7  ;;  %v909_v36 = vpop.eup %908  ;;  %v632_v58 = vmul.f32 %v581_v35, %v1999_v46  ;;  %v633_v6 = vmul.f32 %v583_v63, %v2000_v43  ;;  %v2003_v52 = vsub.f32 0.0, %v1690_v44  ;;  %v2012_v7 = vld [vmem:[#allocation14_spill] sm:$0xff]  ;;  %v2014_v46 = vld [vmem:[#allocation15_spill] sm:$0xff] }
  0x90   :  { %v639_v32 = vmul.f32 %v595_v54, %v2001_v39  ;;  %v911_v41 = vpop.eup %910  ;;  %v605_v29 = vmul.f32 0.6931472, %v909_v36  ;;  %v634_v49 = vmul.f32 %v585_v18, %v2002_v47  ;;  %v603_v4 = vmul.f32 0.6931472, %v907_v17  ;;  %v2018_v47 = vld [vmem:[#allocation18_spill] sm:$0xff] }
  0x91   :  { %v635_v48 = vmul.f32 %v587_v22, %v2003_v52  ;;  %v913_v51 = vpop.eup %912  ;;  %v607_v37 = vmul.f32 0.6931472, %v911_v41  ;;  %v652_v1 = vadd.f32 %v636_v40, %v620_v30  ;;  %v653_v62 = vadd.f32 %v637_v12, %v621_v26 }
  0x92   :  { %v915_v35 = vpop.eup %914  ;;  %v609_v55 = vmul.f32 0.6931472, %v913_v51  ;;  %v2004_v63 = vsub.f32 0.0, %v1700_v8  ;;  %v2005_v54 = vsub.f32 0.0, %v1712_v21  ;;  %v654_v15 = vadd.f32 %v638_v59, %v622_v24 }
  0x93   :  { %v917_v0 = vpop.eup %916  ;;  %v611_v53 = vmul.f32 0.6931472, %v915_v35  ;;  %v2006_v18 = vsub.f32 0.0, %v1702_v25  ;;  %v2007_v22 = vsub.f32 0.0, %v1714_v23  ;;  %v655_v19 = vadd.f32 %v639_v32, %v623_v14  ;;  %v2016_v32 = vld [vmem:[#allocation16_spill] sm:$0xff] }
  0x94   :  { %v640_v5 = vmul.f32 %v597_v20, %v2004_v63  ;;  %v644_v50 = vmul.f32 %v605_v29, %v2005_v54  ;;  %v919_v30 = vpop.eup %918  ;;  %v613_v26 = vmul.f32 0.6931472, %v917_v0  ;;  %v2008_v38 = vsub.f32 0.0, %v1704_v11 }
  0x95   :  { %v641_v44 = vmul.f32 %v599_v56, %v2006_v18  ;;  %v645_v61 = vmul.f32 %v607_v37, %v2007_v22  ;;  %v2009_v8 = vsub.f32 0.0, %v1717_v57  ;;  %v921_v12 = vpop.eup %920  ;;  %v615_v24 = vmul.f32 0.6931472, %v919_v30 }
  0x96   :  { %v642_v40 = vmul.f32 %v601_v45, %v2008_v38  ;;  %v660_v21 = vadd.f32 %v644_v50, %v628_v34  ;;  %v2010_v17 = vsub.f32 0.0, %v1707_v10  ;;  %v2011_v25 = vsub.f32 0.0, %v1719_v60  ;;  %v923_v16 = vpop.eup %922 }
  0x97   :  { %v646_v28 = vmul.f32 %v609_v55, %v2009_v8  ;;  %v661_v23 = vadd.f32 %v645_v61, %v629_v3  ;;  %v617_v14 = vmul.f32 0.6931472, %v921_v12  ;;  %v2013_v59 = vsub.f32 0.0, %v2012_v7 }
  0x98   :  { %v643_v20 = vmul.f32 %v603_v4, %v2010_v17  ;;  %v647_v31 = vmul.f32 %v611_v53, %v2011_v25  ;;  %v656_v11 = vadd.f32 %v640_v5, %v1798_v42  ;;  %v619_v57 = vmul.f32 0.6931472, %v923_v16 }
  0x99   :  { %v648_v36 = vmul.f32 %v613_v26, %v2013_v59  ;;  %v662_v56 = vadd.f32 %v646_v28, %v630_v9  ;;  %v2015_v34 = vsub.f32 0.0, %v2014_v46  ;;  %v657_v39 = vadd.f32 %v641_v44, %v1802_v27 }
  0x9a   :  { %v663_v10 = vadd.f32 %v647_v31, %v631_v33  ;;  %v2017_v41 = vsub.f32 0.0, %v2016_v32  ;;  %v658_v3 = vadd.f32 %v642_v40, %v1806_v13  ;;  %v668_v29 = vadd.f32 %v660_v21, %v652_v1 }
  0x9b   :  { %v649_v43 = vmul.f32 %v615_v24, %v2015_v34  ;;  %v664_v45 = vadd.f32 %v648_v36, %v632_v58  ;;  %v2019_v52 = vsub.f32 0.0, %v2018_v47  ;;  %v659_v4 = vadd.f32 %v643_v20, %v627_v2 }
  0x9c   :  { %v650_v60 = vmul.f32 %v617_v14, %v2017_v41  ;;  %v669_v9 = vadd.f32 %v661_v23, %v653_v62  ;;  %v670_v35 = vadd.f32 %v662_v56, %v654_v15  ;;  %v671_v5 = vadd.f32 %v663_v10, %v655_v19 }
  0x9d   :  { %v651_v51 = vmul.f32 %v619_v57, %v2019_v52  ;;  %v665_v42 = vadd.f32 %v649_v43, %v633_v6  ;;  %v672_v55 = vadd.f32 %v664_v45, %v656_v11 }
  0x9e   :  { %v666_v37 = vadd.f32 %v650_v60, %v634_v49 }
  0x9f   :  { %v667_v63 = vadd.f32 %v651_v51, %v635_v48  ;;  %v673_v27 = vadd.f32 %v665_v42, %v657_v39  ;;  %v676_v54 = vadd.f32 %v672_v55, %v668_v29 }
  0xa0   :  { %v674_v33 = vadd.f32 %v666_v37, %v658_v3 }
  0xa1   :  { %v675_v50 = vadd.f32 %v667_v63, %v659_v4  ;;  %v677_v0 = vadd.f32 %v673_v27, %v669_v9 }
  0xa2   :  { %v678_v53 = vadd.f32 %v674_v33, %v670_v35 }
  0xa3   :  { %v679_v13 = vadd.f32 %v675_v50, %v671_v5 }
  0xa4   :  { %v680_v58 = vadd.f32 %v678_v53, %v676_v54 }
  0xa5   :  { %v681_v1 = vadd.f32 %v679_v13, %v677_v0 }
  0xa7   :  { %v682_v2 = vadd.f32 %v681_v1, %v680_v58 }
  0xa9   :  { %684 = vst.msk [vmem:[#allocation2] sm:$0xff] %vm683_vm0, %v682_v2 }
  0xaa   :  { %935 = shalt.err (!%p932_p4)
}
  0xab   :  { %s936_s26 = scalar_lea.hbm %s1875_s2, 128 }
  0xac   :  { %p937_p5 = scmp.ne.s32.totalorder %s1875_s2, %s936_s26  ;;  %p940_p6 = scmp.lt.u32.totalorder %s936_s26, %s1875_s2 }
  0xae   :  { %p942_p7 = pnand %p940_p6, %p937_p5 }
  0xb0   :  { %945 = shalt.err (!%p942_p7)
}
  0xb1   :  { %694 = dma.vmem_to_hbm [thread:$0]  %s692_s22, 128, %s1875_s2, [#allocation3]  }
  0xb2   :  { %946 = dma.done.wait [#allocation3], 128  }
  0xb3   :  { %947 = vsyncadd [#allocation3], 4294967168 }
  0xb4   :  { %698 = vsyncpa [#allocation3], 1 }

</bundles_post_ra>
